<compile_context>
chip_gen: v6e
topology: v6e:2x2x1
jax: 0.10.0
libtpu: 0.0.40
codegen_flags: <defaults>
</compile_context>

<pallas_src>
import jax
import jax.numpy as jnp
from jax.experimental import pallas as pl
from jax.experimental.pallas import tpu as pltpu


def _fc_kernel(x_ref, w1_ref, b1_ref, w2_ref, b2_ref, w3_ref, b3_ref, o_ref):
    # fc1: bf16 operands, f32 accumulation on the MXU (dominant layer).
    h1 = jnp.dot(x_ref[...], w1_ref[...], preferred_element_type=jnp.float32)
    h1 = jnp.maximum(h1 + b1_ref[...], 0.0)

    # fc2 / fc3: tiny (128x128) f32 matmuls.
    h2 = jnp.dot(h1, w2_ref[...], preferred_element_type=jnp.float32)
    h2 = jnp.maximum(h2 + b2_ref[...], 0.0)

    h3 = jnp.dot(h2, w3_ref[...], preferred_element_type=jnp.float32)
    h3 = jnp.maximum(h3 + b3_ref[...], 0.0)

    # F.normalize(p=2, dim=-1, eps=1e-12): x / max(||x||_2, eps).
    # Padded lanes of h3 are exactly zero, so the norm over 128 lanes equals the
    # norm over the real 20 features.
    norm = jnp.sqrt(jnp.sum(h3 * h3, axis=-1, keepdims=True))
    inv = pl.reciprocal(jnp.maximum(norm, 1e-12), approx=False)  # EUP, not VALU divide
    o_ref[...] = (h3 * inv).astype(o_ref.dtype)


def _round_up(n, m):
    return ((n + m - 1) // m) * m


def fully_connected_forward(x, w1, b1, w2, b2, w3, b3, *, bm=256):
    """x: (B, D_in) f32. Weights stored as (in, out) so y = x @ W + b. Returns (B, 20) f32."""
    B, D_in = x.shape
    H1, H2, H3 = w1.shape[1], w2.shape[1], w3.shape[1]

    # Lane-align every dimension that feeds the MXU / store path.
    D_in_p = _round_up(D_in, 128)
    H1p, H2p, H3p = _round_up(H1, 128), _round_up(H2, 128), _round_up(H3, 128)

    # Batch tile: multiple of 8, no larger than the (padded) batch.
    bm = max(8, _round_up(min(bm, _round_up(B, 8)), 8))
    B_p = _round_up(B, bm)

    # Zero padding is semantics-preserving: zero weight columns + zero bias give
    # ReLU(0) = 0 activations in the padded lanes, which also leave the L2 norm intact.
    x_p = jnp.pad(x, ((0, B_p - B), (0, D_in_p - D_in))).astype(jnp.bfloat16)
    w1_p = jnp.pad(w1, ((0, D_in_p - D_in), (0, H1p - H1))).astype(jnp.bfloat16)
    b1_p = jnp.pad(b1.reshape(1, -1).astype(jnp.float32), ((0, 0), (0, H1p - H1)))
    w2_p = jnp.pad(w2.astype(jnp.float32), ((0, H1p - H1), (0, H2p - H2)))
    b2_p = jnp.pad(b2.reshape(1, -1).astype(jnp.float32), ((0, 0), (0, H2p - H2)))
    w3_p = jnp.pad(w3.astype(jnp.float32), ((0, H2p - H2), (0, H3p - H3)))
    b3_p = jnp.pad(b3.reshape(1, -1).astype(jnp.float32), ((0, 0), (0, H3p - H3)))

    grid = (B_p // bm,)

    flops = 2 * B_p * (D_in_p * H1p + H1p * H2p + H2p * H3p)
    bytes_accessed = (
        x_p.size * 2 + w1_p.size * 2
        + (w2_p.size + w3_p.size + b1_p.size + b2_p.size + b3_p.size) * 4
        + B_p * H3p * 4
    )
    cost = pl.CostEstimate(flops=flops, transcendentals=2 * B_p,
                           bytes_accessed=bytes_accessed)

    out_padded = pl.pallas_call(
        _fc_kernel,
        out_shape=jax.ShapeDtypeStruct((B_p, H3p), jnp.float32),
        grid_spec=pltpu.PrefetchScalarGridSpec(
            num_scalar_prefetch=0,
            grid=grid,
            in_specs=[
                pl.BlockSpec((bm, D_in_p), lambda i: (i, 0)),   # x tile over batch
                pl.BlockSpec((D_in_p, H1p), lambda i: (0, 0)),  # w1 (constant block -> no re-DMA)
                pl.BlockSpec((1, H1p), lambda i: (0, 0)),       # b1
                pl.BlockSpec((H1p, H2p), lambda i: (0, 0)),     # w2
                pl.BlockSpec((1, H2p), lambda i: (0, 0)),       # b2
                pl.BlockSpec((H2p, H3p), lambda i: (0, 0)),     # w3
                pl.BlockSpec((1, H3p), lambda i: (0, 0)),       # b3
            ],
            out_specs=pl.BlockSpec((bm, H3p), lambda i: (i, 0)),  # lane-dense 128-wide store
        ),
        compiler_params=pltpu.CompilerParams(
            dimension_semantics=("parallel",),
        ),
        cost_estimate=cost,
    )(x_p, w1_p, b1_p, w2_p, b2_p, w3_p, b3_p)

    return out_padded[:B, :H3]


def _reference(x, w1, b1, w2, b2, w3, b3):
    # Mirrors the kernel's numerics: bf16 operands / f32 accum for fc1, f32 for fc2/fc3.
    h1 = jnp.dot(x.astype(jnp.bfloat16), w1.astype(jnp.bfloat16),
                 preferred_element_type=jnp.float32) + b1.reshape(1, -1)
    h1 = jnp.maximum(h1, 0.0)
    h2 = jnp.maximum(
        jnp.dot(h1, w2, precision=jax.lax.Precision.HIGHEST) + b2.reshape(1, -1), 0.0)
    h3 = jnp.maximum(
        jnp.dot(h2, w3, precision=jax.lax.Precision.HIGHEST) + b3.reshape(1, -1), 0.0)
    n = jnp.sqrt(jnp.sum(h3 * h3, axis=-1, keepdims=True))
    return h3 / jnp.maximum(n, 1e-12)


if __name__ == "__main__":
    # Small, module-consistent shapes: batch=64, input_size=512, hidden 100 -> 10 -> 20.
    B, D_IN, H1, H2, H3 = 64, 512, 100, 10, 20

    key = jax.random.PRNGKey(0)
    kx, k1, k2, k3, kb1, kb2, kb3 = jax.random.split(key, 7)

    x = jax.random.normal(kx, (B, D_IN), dtype=jnp.float32)

    # Deterministic parameter init (uniform, PyTorch-Linear-style bounds).
    def init_linear(kw, kb, fan_in, fan_out):
        bound = 1.0 / jnp.sqrt(fan_in)
        w = jax.random.uniform(kw, (fan_in, fan_out), jnp.float32, -bound, bound)
        b = jax.random.uniform(kb, (fan_out,), jnp.float32, -bound, bound)
        return w, b

    w1, b1 = init_linear(k1, kb1, D_IN, H1)
    w2, b2 = init_linear(k2, kb2, H1, H2)
    w3, b3 = init_linear(k3, kb3, H2, H3)

    out = fully_connected_forward(x, w1, b1, w2, b2, w3, b3)
    out = jax.block_until_ready(out)
    ref = _reference(x, w1, b1, w2, b2, w3, b3)
    assert out.shape == (B, H3)
    assert jnp.allclose(out, ref, atol=1e-3, rtol=1e-3)

    # Ragged batch (not a multiple of 8) exercises the batch-padding path.
    x_r = x[:50]
    out_r = jax.block_until_ready(fully_connected_forward(x_r, w1, b1, w2, b2, w3, b3))
    ref_r = _reference(x_r, w1, b1, w2, b2, w3, b3)
    assert out_r.shape == (50, H3)
    assert jnp.allclose(out_r, ref_r, atol=1e-3, rtol=1e-3)

    print("KERNEL_OK")
</pallas_src>

<mosaic_0001>
module attributes {stable_mosaic.version = 11 : i64} {
  func.func @_fc_kernel(%arg0: i32, %arg1: memref<64x512xbf16, #tpu.memory_space<vmem>>, %arg2: memref<512x128xbf16, #tpu.memory_space<vmem>>, %arg3: memref<1x128xf32, #tpu.memory_space<vmem>>, %arg4: memref<128x128xf32, #tpu.memory_space<vmem>>, %arg5: memref<1x128xf32, #tpu.memory_space<vmem>>, %arg6: memref<128x128xf32, #tpu.memory_space<vmem>>, %arg7: memref<1x128xf32, #tpu.memory_space<vmem>>, %arg8: memref<64x128xf32, #tpu.memory_space<vmem>>) attributes {dimension_semantics = [#tpu.dimension_semantics<parallel>], iteration_bounds = array<i64: 1>, scalar_prefetch = 0 : i64, scratch_operands = 0 : i64, tpu.core_type = #tpu.core_type<tc>, window_params = [{transform_indices = @transform_0, window_bounds = array<i64: 64, 512>}, {pipeline_mode = #tpu.pipeline_mode<synchronous>, transform_indices = @transform_1, window_bounds = array<i64: 512, 128>}, {pipeline_mode = #tpu.pipeline_mode<synchronous>, transform_indices = @transform_2, window_bounds = array<i64: 1, 128>}, {pipeline_mode = #tpu.pipeline_mode<synchronous>, transform_indices = @transform_3, window_bounds = array<i64: 128, 128>}, {pipeline_mode = #tpu.pipeline_mode<synchronous>, transform_indices = @transform_4, window_bounds = array<i64: 1, 128>}, {pipeline_mode = #tpu.pipeline_mode<synchronous>, transform_indices = @transform_5, window_bounds = array<i64: 128, 128>}, {pipeline_mode = #tpu.pipeline_mode<synchronous>, transform_indices = @transform_6, window_bounds = array<i64: 1, 128>}, {transform_indices = @transform_7, window_bounds = array<i64: 64, 128>}]} {
    %c0 = arith.constant 0 : index
    %c0_0 = arith.constant 0 : index
    %0 = vector.load %arg1[%c0, %c0_0] : memref<64x512xbf16, #tpu.memory_space<vmem>>, vector<64x512xbf16>
    %c0_1 = arith.constant 0 : index
    %c0_2 = arith.constant 0 : index
    %1 = vector.load %arg2[%c0_1, %c0_2] : memref<512x128xbf16, #tpu.memory_space<vmem>>, vector<512x128xbf16>
    %cst = arith.constant dense<0.000000e+00> : vector<64x128xf32>
    %2 = tpu.matmul %0, %1, %cst {dimension_numbers = #tpu.dot_dimension_numbers<[1], [0], [0], [1], [0, 0, 1, 1], [], []>} : vector<64x512xbf16>, vector<512x128xbf16>, vector<64x128xf32> -> vector<64x128xf32>
    %c0_3 = arith.constant 0 : index
    %c0_4 = arith.constant 0 : index
    %3 = vector.load %arg3[%c0_3, %c0_4] : memref<1x128xf32, #tpu.memory_space<vmem>>, vector<1x128xf32>
    %4 = vector.broadcast %3 : vector<1x128xf32> to vector<64x128xf32>
    %5 = arith.addf %2, %4 : vector<64x128xf32>
    %cst_5 = arith.constant 0.000000e+00 : f32
    %6 = vector.broadcast %cst_5 : f32 to vector<64x128xf32>
    %7 = arith.maximumf %5, %6 : vector<64x128xf32>
    %c0_6 = arith.constant 0 : index
    %c0_7 = arith.constant 0 : index
    %8 = vector.load %arg4[%c0_6, %c0_7] : memref<128x128xf32, #tpu.memory_space<vmem>>, vector<128x128xf32>
    %cst_8 = arith.constant dense<0.000000e+00> : vector<64x128xf32>
    %9 = tpu.matmul %7, %8, %cst_8 {dimension_numbers = #tpu.dot_dimension_numbers<[1], [0], [0], [1], [0, 0, 1, 1], [], []>} : vector<64x128xf32>, vector<128x128xf32>, vector<64x128xf32> -> vector<64x128xf32>
    %c0_9 = arith.constant 0 : index
    %c0_10 = arith.constant 0 : index
    %10 = vector.load %arg5[%c0_9, %c0_10] : memref<1x128xf32, #tpu.memory_space<vmem>>, vector<1x128xf32>
    %11 = vector.broadcast %10 : vector<1x128xf32> to vector<64x128xf32>
    %12 = arith.addf %9, %11 : vector<64x128xf32>
    %cst_11 = arith.constant 0.000000e+00 : f32
    %13 = vector.broadcast %cst_11 : f32 to vector<64x128xf32>
    %14 = arith.maximumf %12, %13 : vector<64x128xf32>
    %c0_12 = arith.constant 0 : index
    %c0_13 = arith.constant 0 : index
    %15 = vector.load %arg6[%c0_12, %c0_13] : memref<128x128xf32, #tpu.memory_space<vmem>>, vector<128x128xf32>
    %cst_14 = arith.constant dense<0.000000e+00> : vector<64x128xf32>
    %16 = tpu.matmul %14, %15, %cst_14 {dimension_numbers = #tpu.dot_dimension_numbers<[1], [0], [0], [1], [0, 0, 1, 1], [], []>} : vector<64x128xf32>, vector<128x128xf32>, vector<64x128xf32> -> vector<64x128xf32>
    %c0_15 = arith.constant 0 : index
    %c0_16 = arith.constant 0 : index
    %17 = vector.load %arg7[%c0_15, %c0_16] : memref<1x128xf32, #tpu.memory_space<vmem>>, vector<1x128xf32>
    %18 = vector.broadcast %17 : vector<1x128xf32> to vector<64x128xf32>
    %19 = arith.addf %16, %18 : vector<64x128xf32>
    %cst_17 = arith.constant 0.000000e+00 : f32
    %20 = vector.broadcast %cst_17 : f32 to vector<64x128xf32>
    %21 = arith.maximumf %19, %20 : vector<64x128xf32>
    %22 = arith.mulf %21, %21 : vector<64x128xf32>
    %cst_18 = arith.constant dense<0.000000e+00> : vector<64xf32>
    %23 = vector.multi_reduction <add>, %22, %cst_18 [1] : vector<64x128xf32> to vector<64xf32>
    %24 = vector.shape_cast %23 : vector<64xf32> to vector<64x1xf32>
    %25 = math.sqrt %24 : vector<64x1xf32>
    %cst_19 = arith.constant 9.99999996E-13 : f32
    %26 = vector.broadcast %cst_19 : f32 to vector<64x1xf32>
    %27 = arith.maximumf %25, %26 : vector<64x1xf32>
    %28 = tpu.reciprocal %27 : vector<64x1xf32> -> vector<64x1xf32>
    %29 = vector.broadcast %28 : vector<64x1xf32> to vector<64x128xf32>
    %30 = arith.mulf %21, %29 : vector<64x128xf32>
    %c0_20 = arith.constant 0 : index
    %c0_21 = arith.constant 0 : index
    %31 = vector.load %arg8[%c0_20, %c0_21] : memref<64x128xf32, #tpu.memory_space<vmem>>, vector<64x128xf32>
    tpu.vector_store %arg8[%c0_20, %c0_21], %30 {strides = array<i32>} : memref<64x128xf32, #tpu.memory_space<vmem>>, vector<64x128xf32>,
    return
  }
  func.func @transform_0(%arg0: i32) -> (i32, i32) {
    %c0_i32 = arith.constant 0 : i32
    %c0_i32_0 = arith.constant 0 : i32
    return %arg0, %c0_i32 : i32, i32
  }
  func.func @transform_1(%arg0: i32) -> (i32, i32) {
    %c0_i32 = arith.constant 0 : i32
    %c0_i32_0 = arith.constant 0 : i32
    %c0_i32_1 = arith.constant 0 : i32
    return %c0_i32, %c0_i32_0 : i32, i32
  }
  func.func @transform_2(%arg0: i32) -> (i32, i32) {
    %c0_i32 = arith.constant 0 : i32
    %c0_i32_0 = arith.constant 0 : i32
    %c0_i32_1 = arith.constant 0 : i32
    return %c0_i32, %c0_i32_0 : i32, i32
  }
  func.func @transform_3(%arg0: i32) -> (i32, i32) {
    %c0_i32 = arith.constant 0 : i32
    %c0_i32_0 = arith.constant 0 : i32
    %c0_i32_1 = arith.constant 0 : i32
    return %c0_i32, %c0_i32_0 : i32, i32
  }
  func.func @transform_4(%arg0: i32) -> (i32, i32) {
    %c0_i32 = arith.constant 0 : i32
    %c0_i32_0 = arith.constant 0 : i32
    %c0_i32_1 = arith.constant 0 : i32
    return %c0_i32, %c0_i32_0 : i32, i32
  }
  func.func @transform_5(%arg0: i32) -> (i32, i32) {
    %c0_i32 = arith.constant 0 : i32
    %c0_i32_0 = arith.constant 0 : i32
    %c0_i32_1 = arith.constant 0 : i32
    return %c0_i32, %c0_i32_0 : i32, i32
  }
  func.func @transform_6(%arg0: i32) -> (i32, i32) {
    %c0_i32 = arith.constant 0 : i32
    %c0_i32_0 = arith.constant 0 : i32
    %c0_i32_1 = arith.constant 0 : i32
    return %c0_i32, %c0_i32_0 : i32, i32
  }
  func.func @transform_7(%arg0: i32) -> (i32, i32) {
    %c0_i32 = arith.constant 0 : i32
    %c0_i32_0 = arith.constant 0 : i32
    return %arg0, %c0_i32 : i32, i32
  }
}

</mosaic_0001>

<bundles_post_ra>
// kernel: tpu_custom_call.1
= control target key start
LH: loop header
LB: loop body
LE: loop exit
PB: predicated region body
PF: predicated region fallthrough
CT: control target
= control target key end

     0   :  { %12 = vsyncpa [#allocation3], 0  ;;  %s1591_s0 = inlined_call_operand.hbm [shape: bf16[64,512], index: 0, kind: input, shape index: {}]   ;;  %s1592_s1 = inlined_call_operand.hbm [shape: bf16[512,128], index: 1, kind: input, shape index: {}]   ;;  %s1593_s2 = inlined_call_operand.vmem [shape: f32[1,128], index: 2, kind: input, shape index: {}]   ;;  %s1594_s3 = inlined_call_operand.hbm [shape: f32[128,128], index: 3, kind: input, shape index: {}]   ;;  %s1595_s4 = inlined_call_operand.vmem [shape: f32[1,128], index: 4, kind: input, shape index: {}]   ;;  %s1596_s5 = inlined_call_operand.hbm [shape: f32[128,128], index: 5, kind: input, shape index: {}]   ;;  %s1597_s6 = inlined_call_operand.vmem [shape: f32[1,128], index: 6, kind: input, shape index: {}]   ;;  %s1598_s7 = inlined_call_operand.hbm [shape: f32[64,128], index: 7, kind: output, shape index: {}]  }
   0x1   :  { %13 = vsyncpa [#allocation6], 0 }
   0x2   :  { %14 = vsyncpa [#allocation9], 0 }
   0x3   :  { %15 = vsyncpa [#allocation4], 0  ;;  %s1457_s24 = smov [#allocation5]  }
   0x4   :  { %s33_s25 = sshll.u32 %s1457_s24, 4  ;;  %s34_s25 = int_to_ptr.vmem [resolvable:$true] %s33_s25 }
   0x5   :  { %s1357_s26 = scalar_lea.vmem %s34_s25, 4096  ;;  %p1362_p1 = scmp.lt.s32.totalorder %s34_s25, %s34_s25 }
   0x6   :  { %p1358_p0 = scmp.ne.s32.totalorder %s34_s25, %s1357_s26  ;;  %p1363_p2 = scmp.lt.s32.totalorder %s1357_s26, %s1357_s26 }
   0x8   :  { %p1364_p3 = por %p1363_p2, %p1362_p1 }
   0xa   :  { %p1365_p4 = pnand %p1364_p3, %p1358_p0 }
   0xc   :  { %1368 = shalt.err (!%p1365_p4)
}
   0xd   :  { %s1458_s27 = smov 64   ;;  %s1459_s28 = smov 4  }
   0xe   :  { %39 = dma.hbm_to_vmem [thread:$0]  %s1592_s1, 4096, %s34_s25, [#allocation6], %s1458_s27, %s1458_s27, %s1459_s28  }
   0xf   :  { %s1460_s8 = smov [#allocation2]  }
  0x10   :  { %s21_s9 = sshll.u32 %s1460_s8, 4  ;;  %s22_s9 = int_to_ptr.vmem [resolvable:$true] %s21_s9 }
  0x11   :  { %s1377_s10 = scalar_lea.vmem %s22_s9, 2048  ;;  %p1382_p6 = scmp.lt.s32.totalorder %s22_s9, %s22_s9 }
  0x12   :  { %p1378_p5 = scmp.ne.s32.totalorder %s22_s9, %s1377_s10  ;;  %p1383_p7 = scmp.lt.s32.totalorder %s1377_s10, %s1377_s10 }
  0x14   :  { %p1384_p8 = por %p1383_p7, %p1382_p6 }
  0x16   :  { %p1385_p9 = pnand %p1384_p8, %p1378_p5 }
  0x18   :  { %1388 = shalt.err (!%p1385_p9)
}
  0x19   :  { %s1461_s11 = smov 256   ;;  %s1462_s12 = smov 16  }
  0x1a   :  { %27 = dma.hbm_to_vmem [thread:$0]  %s1591_s0, 2048, %s22_s9, [#allocation3], %s1461_s11, %s1461_s11, %s1462_s12  }
  0x1b   :  { %s1463_s15 = smov [#allocation7]  }
  0x1c   :  { %s47_s16 = sshll.u32 %s1463_s15, 4  ;;  %s48_s16 = int_to_ptr.vmem [resolvable:$true] %s47_s16 }
  0x1d   :  { %s1397_s1 = scalar_lea.vmem %s48_s16, 2048  ;;  %p1402_p11 = scmp.lt.s32.totalorder %s48_s16, %s48_s16 }
  0x1e   :  { %p1398_p10 = scmp.ne.s32.totalorder %s48_s16, %s1397_s1  ;;  %p1403_p12 = scmp.lt.s32.totalorder %s1397_s1, %s1397_s1 }
  0x20   :  { %p1404_p13 = por %p1403_p12, %p1402_p11 }
  0x22   :  { %p1405_p0 = pnand %p1404_p13, %p1398_p10 }
  0x24   :  { %1408 = shalt.err (!%p1405_p0)
}
  0x25   :  { %s1464_s17 = smov 128   ;;  %s1465_s18 = smov 8  }
  0x26   :  { %53 = dma.hbm_to_vmem [thread:$0]  %s1594_s3, 2048, %s48_s16, [#allocation6], %s1464_s17, %s1464_s17, %s1465_s18  }
  0x27   :  { %s1466_s0 = smov [#allocation8]  }
  0x28   :  { %s61_s21 = sshll.u32 %s1466_s0, 4  ;;  %s62_s21 = int_to_ptr.vmem [resolvable:$true] %s61_s21 }
  0x29   :  { %s1417_s22 = scalar_lea.vmem %s62_s21, 2048  ;;  %p1422_p2 = scmp.lt.s32.totalorder %s62_s21, %s62_s21 }
  0x2a   :  { %p1418_p1 = scmp.ne.s32.totalorder %s62_s21, %s1417_s22  ;;  %p1423_p3 = scmp.lt.s32.totalorder %s1417_s22, %s1417_s22 }
  0x2c   :  { %p1424_p4 = por %p1423_p3, %p1422_p2 }
  0x2e   :  { %p1425_p5 = pnand %p1424_p4, %p1418_p1 }
  0x30   :  { %1428 = shalt.err (!%p1425_p5)
}
  0x31   :  { %67 = dma.hbm_to_vmem [thread:$0]  %s1596_s5, 2048, %s62_s21, [#allocation9], %s1464_s17, %s1464_s17, %s1465_s18  }
  0x32   :  { %1449 = dma.done.wait [#allocation3], 2048  }
  0x33   :  { %1450 = vsyncadd [#allocation3], 4294965248 }
  0x34   :  { %1451 = dma.done.wait [#allocation6], 6144  }
  0x35   :  { %1452 = vsyncadd [#allocation6], 4294961152 }
  0x36   :  { %1453 = dma.done.wait [#allocation9], 2048  }
  0x37   :  { %1454 = vsyncadd [#allocation9], 4294965248  ;;  %v1261_v0 = vld [vmem:[#allocation5 + $0x78] sm:$0xff]   ;;  %v1265_v4 = vld [vmem:[#allocation5 + $0x70] sm:$0xff]  }
  0x38   :  { %v1262_v1 = vld [vmem:[#allocation5 + $0xf8] sm:$0xff]   ;;  %1034 = vmatprep.subr.bf16.mxu0 %v1261_v0  ;;  %v1266_v5 = vld [vmem:[#allocation5 + $0xf0] sm:$0xff]   ;;  %v1269_v8 = vld [vmem:[#allocation5 + $0x68] sm:$0xff]  }
  0x39   :  { %v1263_v2 = vld [vmem:[#allocation5 + $0x38] sm:$0xff]   ;;  %1074 = vmatprep.subr.bf16.mxu1 %v1262_v1  ;;  %v1267_v6 = vld [vmem:[#allocation5 + $0x30] sm:$0xff]   ;;  %v1270_v9 = vld [vmem:[#allocation5 + $0xe8] sm:$0xff]  }
  0x3a   :  { %v1264_v3 = vld [vmem:[#allocation5 + $0xb8] sm:$0xff]   ;;  %1035 = vmatpush3.bf16.msra.mxu0 %v1263_v2  ;;  %v1268_v7 = vld [vmem:[#allocation5 + $0xb0] sm:$0xff]   ;;  %v1271_v10 = vld [vmem:[#allocation5 + $0x28] sm:$0xff]  }
  0x3b   :  { %1075 = vmatpush3.bf16.msra.mxu1 %v1264_v3  ;;  %1036 = vmatprep.subr.bf16.mxu0 %v1265_v4  ;;  %v1272_v11 = vld [vmem:[#allocation5 + $0xa8] sm:$0xff]   ;;  %v1273_v12 = vld [vmem:[#allocation5 + $0x60] sm:$0xff]   ;;  %v1277_v16 = vld [vmem:[#allocation5 + $0x58] sm:$0xff]  }
  0x3c   :  { %1076 = vmatprep.subr.bf16.mxu1 %v1266_v5  ;;  %v1274_v13 = vld [vmem:[#allocation5 + $0xe0] sm:$0xff]   ;;  %v1278_v17 = vld [vmem:[#allocation5 + $0xd8] sm:$0xff]   ;;  %v1281_v20 = vld [vmem:[#allocation5 + $0x50] sm:$0xff]  }
  0x3d   :  { %v1275_v14 = vld [vmem:[#allocation5 + $0x20] sm:$0xff]   ;;  %v1279_v18 = vld [vmem:[#allocation5 + $0x18] sm:$0xff]   ;;  %v1282_v21 = vld [vmem:[#allocation5 + $0xd0] sm:$0xff]  }
  0x3e   :  { %1037 = vmatpush3.bf16.msra.mxu0 %v1267_v6  ;;  %v1276_v15 = vld [vmem:[#allocation5 + $0xa0] sm:$0xff]   ;;  %v1280_v19 = vld [vmem:[#allocation5 + $0x98] sm:$0xff]   ;;  %v1283_v22 = vld [vmem:[#allocation5 + $0x10] sm:$0xff]  }
  0x3f   :  { %1077 = vmatpush3.bf16.msra.mxu1 %v1268_v7  ;;  %1038 = vmatprep.subr.bf16.mxu0 %v1269_v8  ;;  %v1284_v23 = vld [vmem:[#allocation5 + $0x90] sm:$0xff]   ;;  %v1285_v24 = vld [vmem:[#allocation5 + $0x48] sm:$0xff]   ;;  %v1289_v28 = vld [vmem:[#allocation5 + $0x40] sm:$0xff]  }
  0x40   :  { %1078 = vmatprep.subr.bf16.mxu1 %v1270_v9  ;;  %v1286_v25 = vld [vmem:[#allocation5 + $0xc8] sm:$0xff]   ;;  %v1290_v29 = vld [vmem:[#allocation5 + $0xc0] sm:$0xff]   ;;  %v595_v42 = vld [vmem:[#allocation7 + $0x78] sm:$0xff] }
  0x41   :  { %v1287_v26 = vld [vmem:[#allocation5 + $0x8] sm:$0xff]   ;;  %v1291_v30 = vld [vmem:[#allocation5] sm:$0xff]   ;;  %v594_v43 = vld [vmem:[#allocation7 + $0x70] sm:$0xff] }
  0x42   :  { %1039 = vmatpush3.bf16.msra.mxu0 %v1271_v10  ;;  %v1288_v27 = vld [vmem:[#allocation5 + $0x88] sm:$0xff]   ;;  %v1292_v31 = vld [vmem:[#allocation5 + $0x80] sm:$0xff]   ;;  %v591_v50 = vld [vmem:[#allocation7 + $0x58] sm:$0xff] }
  0x43   :  { %1079 = vmatpush3.bf16.msra.mxu1 %v1272_v11  ;;  %1040 = vmatprep.subr.bf16.mxu0 %v1273_v12  ;;  %v1293_v32 = vld [vmem:[#allocation2] ss:$16 sps:$4 sm:$0xff]   ;;  %v1295_v33 = vld [vmem:[#allocation2 + $0x4] ss:$16 sps:$4 sm:$0xff]   ;;  %v1296_v34 = vld [vmem:[#allocation2 + $0x8] ss:$16 sps:$4 sm:$0xff]  }
  0x44   :  { %1080 = vmatprep.subr.bf16.mxu1 %v1274_v13  ;;  %v1298_v35 = vld [vmem:[#allocation2 + $0xc] ss:$16 sps:$4 sm:$0xff]   ;;  %474 = vmatprep.mubr.bf16.mxu0 %v1295_v33  ;;  %v1299_v36 = vld [vmem:[#allocation2 + $0x24] ss:$16 sps:$4 sm:$0xff]   ;;  %v1303_v38 = vld [vmem:[#allocation2 + $0x20] ss:$16 sps:$4 sm:$0xff]  }
  0x45   :  { %539 = vmatprep.mubr.bf16.mxu1 %v1298_v35  ;;  %v1301_v37 = vld [vmem:[#allocation2 + $0x2c] ss:$16 sps:$4 sm:$0xff]   ;;  %v1304_v39 = vld [vmem:[#allocation2 + $0x28] ss:$16 sps:$4 sm:$0xff]   ;;  %v1305_v40 = vld [vmem:[#allocation2 + $0x44] ss:$16 sps:$4 sm:$0xff]  }
  0x46   :  { %1041 = vmatpush3.bf16.msra.mxu0 %v1275_v14  ;;  %v1307_v41 = vld [vmem:[#allocation2 + $0x4c] ss:$16 sps:$4 sm:$0xff]   ;;  %v1309_v45 = vld [vmem:[#allocation2 + $0x40] ss:$16 sps:$4 sm:$0xff]   ;;  %v1310_v47 = vld [vmem:[#allocation2 + $0x48] ss:$16 sps:$4 sm:$0xff]  }
  0x47   :  { %1081 = vmatpush3.bf16.msra.mxu1 %v1276_v15  ;;  %1042 = vmatprep.subr.bf16.mxu0 %v1277_v16  ;;  %v593_v44 = vld [vmem:[#allocation7 + $0x68] sm:$0xff]  ;;  %v592_v46 = vld [vmem:[#allocation7 + $0x60] sm:$0xff]  ;;  %v590_v51 = vld [vmem:[#allocation7 + $0x50] sm:$0xff] }
  0x48   :  { %1082 = vmatprep.subr.bf16.mxu1 %v1278_v17  ;;  %v1311_v48 = vld [vmem:[#allocation2 + $0x64] ss:$16 sps:$4 sm:$0xff]   ;;  %v1313_v49 = vld [vmem:[#allocation2 + $0x6c] ss:$16 sps:$4 sm:$0xff]   ;;  %v1315_v52 = vld [vmem:[#allocation2 + $0x60] ss:$16 sps:$4 sm:$0xff]  }
  0x49   :  { %v589_v53 = vld [vmem:[#allocation7 + $0x48] sm:$0xff]  ;;  %v588_v55 = vld [vmem:[#allocation7 + $0x40] sm:$0xff]  ;;  %v587_v56 = vld [vmem:[#allocation7 + $0x38] sm:$0xff] }
  0x4a   :  { %1043 = vmatpush3.bf16.msra.mxu0 %v1279_v18  ;;  %v1316_v54 = vld [vmem:[#allocation2 + $0x68] ss:$16 sps:$4 sm:$0xff]   ;;  %v586_v57 = vld [vmem:[#allocation7 + $0x30] sm:$0xff]  ;;  %v584_v59 = vld [vmem:[#allocation7 + $0x20] sm:$0xff] }
  0x4b   :  { %1083 = vmatpush3.bf16.msra.mxu1 %v1280_v19  ;;  %1044 = vmatprep.subr.bf16.mxu0 %v1281_v20  ;;  %v585_v58 = vld [vmem:[#allocation7 + $0x28] sm:$0xff]  ;;  %v583_v60 = vld [vmem:[#allocation7 + $0x18] sm:$0xff]  ;;  %v582_v61 = vld [vmem:[#allocation7 + $0x10] sm:$0xff] }
  0x4c   :  { %1084 = vmatprep.subr.bf16.mxu1 %v1282_v21  ;;  %v581_v62 = vld [vmem:[#allocation7 + $0x8] sm:$0xff]  ;;  %v580_v63 = vld [vmem:[#allocation7] sm:$0xff]  ;;  %v731_v0 = vld [vmem:[#allocation8 + $0x78] sm:$0xff] }
  0x4d   :  { %v730_v1 = vld [vmem:[#allocation8 + $0x70] sm:$0xff]  ;;  %v729_v2 = vld [vmem:[#allocation8 + $0x68] sm:$0xff]  ;;  %v728_v3 = vld [vmem:[#allocation8 + $0x60] sm:$0xff] }
  0x4e   :  { %1045 = vmatpush3.bf16.msra.mxu0 %v1283_v22  ;;  %v727_v4 = vld [vmem:[#allocation8 + $0x58] sm:$0xff]  ;;  %v726_v5 = vld [vmem:[#allocation8 + $0x50] sm:$0xff]  ;;  %v725_v6 = vld [vmem:[#allocation8 + $0x48] sm:$0xff] }
  0x4f   :  { %1085 = vmatpush3.bf16.msra.mxu1 %v1284_v23  ;;  %1046 = vmatprep.subr.bf16.mxu0 %v1285_v24  ;;  %v724_v7 = vld [vmem:[#allocation8 + $0x40] sm:$0xff]  ;;  %v723_v8 = vld [vmem:[#allocation8 + $0x38] sm:$0xff]  ;;  %v722_v9 = vld [vmem:[#allocation8 + $0x30] sm:$0xff] }
  0x50   :  { %1086 = vmatprep.subr.bf16.mxu1 %v1286_v25  ;;  %v721_v10 = vld [vmem:[#allocation8 + $0x28] sm:$0xff]  ;;  %v720_v11 = vld [vmem:[#allocation8 + $0x20] sm:$0xff] }
  0x51   :  { %v1529_v14 = vld [vmem:[%s1593_s2] ss:$0 sm:$0xff] }
  0x52   :  { %1047 = vmatpush3.bf16.msra.mxu0 %v1287_v26 }
  0x53   :  { %1087 = vmatpush3.bf16.msra.mxu1 %v1288_v27  ;;  %1048 = vmatprep.subr.bf16.mxu0 %v1289_v28 }
  0x54   :  { %1088 = vmatprep.subr.bf16.mxu1 %v1290_v29 }
  0x56   :  { %1049 = vmatpush3.bf16.msra.mxu0 %v1291_v30 }
  0x57   :  { %1089 = vmatpush3.bf16.msra.mxu1 %v1292_v31  ;;  %1162 = vmatprep.subr.mxu0 %v595_v42 }
  0x58   :  { %1206 = vmatprep.subr.mxu1 %v731_v0 }
  0x59   :  { %475 = vmatmul.mubr.bf16.vlgmr.msra.gmra.mxu0 %v1293_v32 }
  0x5a   :  { %540 = vmatmul.mubr.bf16.vlgmr.msra.gmra.mxu1 %v1296_v34  ;;  %482 = vmatprep.mubr.bf16.mxu0 %v1299_v36 }
  0x5b   :  { %547 = vmatprep.mubr.bf16.mxu1 %v1301_v37  ;;  %1163 = vmatpush3.msra.mxu0 %v595_v42 }
  0x5c   :  { %1164 = vmatprep.subr.mxu0 %v594_v43  ;;  %1207 = vmatpush3.msra.mxu1 %v731_v0 }
  0x5d   :  { %1165 = vmatpush3.msra.mxu0 %v594_v43  ;;  %1208 = vmatprep.subr.mxu1 %v730_v1 }
  0x5e   :  { %1166 = vmatprep.subr.mxu0 %v593_v44  ;;  %1209 = vmatpush3.msra.mxu1 %v730_v1 }
  0x5f   :  { %1167 = vmatpush3.msra.mxu0 %v593_v44  ;;  %1210 = vmatprep.subr.mxu1 %v729_v2 }
  0x60   :  { %1168 = vmatprep.subr.mxu0 %v592_v46  ;;  %1211 = vmatpush3.msra.mxu1 %v729_v2 }
  0x61   :  { %483 = vmatmul.mubr.bf16.gmra.mxu0 %v1303_v38  ;;  %1212 = vmatprep.subr.mxu1 %v728_v3 }
  0x62   :  { %548 = vmatmul.mubr.bf16.gmra.mxu1 %v1304_v39  ;;  %490 = vmatprep.mubr.bf16.mxu0 %v1305_v40 }
  0x63   :  { %555 = vmatprep.mubr.bf16.mxu1 %v1307_v41  ;;  %1169 = vmatpush3.msra.mxu0 %v592_v46 }
  0x64   :  { %1170 = vmatprep.subr.mxu0 %v591_v50  ;;  %1213 = vmatpush3.msra.mxu1 %v728_v3 }
  0x65   :  { %1171 = vmatpush3.msra.mxu0 %v591_v50  ;;  %1214 = vmatprep.subr.mxu1 %v727_v4 }
  0x66   :  { %1172 = vmatprep.subr.mxu0 %v590_v51  ;;  %1215 = vmatpush3.msra.mxu1 %v727_v4 }
  0x67   :  { %1173 = vmatpush3.msra.mxu0 %v590_v51  ;;  %1216 = vmatprep.subr.mxu1 %v726_v5 }
  0x68   :  { %1174 = vmatprep.subr.mxu0 %v589_v53  ;;  %1217 = vmatpush3.msra.mxu1 %v726_v5 }
  0x69   :  { %491 = vmatmul.mubr.bf16.gmra.mxu0 %v1309_v45  ;;  %1218 = vmatprep.subr.mxu1 %v725_v6 }
  0x6a   :  { %556 = vmatmul.mubr.bf16.gmra.mxu1 %v1310_v47  ;;  %498 = vmatprep.mubr.bf16.mxu0 %v1311_v48 }
  0x6b   :  { %563 = vmatprep.mubr.bf16.mxu1 %v1313_v49  ;;  %1175 = vmatpush3.msra.mxu0 %v589_v53 }
  0x6c   :  { %1176 = vmatprep.subr.mxu0 %v588_v55  ;;  %1219 = vmatpush3.msra.mxu1 %v725_v6 }
  0x6d   :  { %1177 = vmatpush3.msra.mxu0 %v588_v55  ;;  %1220 = vmatprep.subr.mxu1 %v724_v7 }
  0x6e   :  { %1178 = vmatprep.subr.mxu0 %v587_v56  ;;  %1221 = vmatpush3.msra.mxu1 %v724_v7 }
  0x6f   :  { %1179 = vmatpush3.msra.mxu0 %v587_v56  ;;  %1222 = vmatprep.subr.mxu1 %v723_v8 }
  0x70   :  { %1180 = vmatprep.subr.mxu0 %v586_v57  ;;  %1223 = vmatpush3.msra.mxu1 %v723_v8 }
  0x71   :  { %499 = vmatmul.mubr.bf16.gmra.mxu0 %v1315_v52  ;;  %1224 = vmatprep.subr.mxu1 %v722_v9 }
  0x72   :  { %564 = vmatmul.mubr.bf16.gmra.mxu1 %v1316_v54  ;;  %1181 = vmatpush3.msra.mxu0 %v586_v57 }
  0x73   :  { %1182 = vmatprep.subr.mxu0 %v585_v58  ;;  %1225 = vmatpush3.msra.mxu1 %v722_v9 }
  0x74   :  { %1183 = vmatpush3.msra.mxu0 %v585_v58  ;;  %1226 = vmatprep.subr.mxu1 %v721_v10 }
  0x75   :  { %1184 = vmatprep.subr.mxu0 %v584_v59  ;;  %1227 = vmatpush3.msra.mxu1 %v721_v10 }
  0x76   :  { %1185 = vmatpush3.msra.mxu0 %v584_v59  ;;  %1228 = vmatprep.subr.mxu1 %v720_v11 }
  0x77   :  { %1186 = vmatprep.subr.mxu0 %v583_v60  ;;  %1229 = vmatpush3.msra.mxu1 %v720_v11 }
  0x78   :  { %1187 = vmatpush3.msra.mxu0 %v583_v60 }
  0x79   :  { %1188 = vmatprep.subr.mxu0 %v582_v61 }
  0x7a   :  { %1189 = vmatpush3.msra.mxu0 %v582_v61 }
  0x7b   :  { %1190 = vmatprep.subr.mxu0 %v581_v62 }
  0x7c   :  { %1191 = vmatpush3.msra.mxu0 %v581_v62 }
  0x7d   :  { %1192 = vmatprep.subr.mxu0 %v580_v63 }
  0x7e   :  { %1193 = vmatpush3.msra.mxu0 %v580_v63 }
 0x119   :  { %v1050_v12 = vpop.f32.mrf.mxu0 }
 0x11a   :  { %v1090_v13 = vpop.f32.mrf.mxu1 }
 0x11b   :  { %v1051_v15 = vpop.f32.mrf.mxu0 }
 0x11c   :  { %v1052_v16 = vadd.f32 %v1051_v15, %v1050_v12  ;;  %v1091_v17 = vpop.f32.mrf.mxu1 }
 0x11d   :  { %v1053_v18 = vpop.f32.mrf.mxu0  ;;  %v1092_v20 = vadd.f32 %v1091_v17, %v1090_v13 }
 0x11e   :  { %v477_v19 = vadd.f32 %v1052_v16, %v1529_v14  ;;  %v1093_v21 = vpop.f32.mrf.mxu1 }
 0x11f   :  { %v1054_v22 = vpop.f32.mrf.mxu0 }
 0x120   :  { %v542_v23 = vadd.f32 %v1092_v20, %v477_v19  ;;  %v1055_v24 = vadd.f32 %v1054_v22, %v1053_v18  ;;  %v1094_v25 = vpop.f32.mrf.mxu1  ;;  %v719_v22 = vld [vmem:[#allocation8 + $0x18] sm:$0xff] }
 0x121   :  { %v1056_v26 = vpop.f32.mrf.mxu0  ;;  %v1095_v29 = vadd.f32 %v1094_v25, %v1093_v21  ;;  %1230 = vmatprep.subr.mxu1 %v719_v22  ;;  %v716_v25 = vld [vmem:[#allocation8] sm:$0xff] }
 0x122   :  { %v572_v27 = vmax.f32 %v542_v23, 0.0  ;;  %v480_v28 = vadd.f32 %v1055_v24, %v1529_v14  ;;  %v1096_v30 = vpop.f32.mrf.mxu1  ;;  %1231 = vmatpush3.msra.mxu1 %v719_v22  ;;  %v718_v23 = vld [vmem:[#allocation8 + $0x10] sm:$0xff]  ;;  %v717_v24 = vld [vmem:[#allocation8 + $0x8] sm:$0xff] }
 0x123   :  { %v1057_v31 = vpop.f32.mrf.mxu0  ;;  %1232 = vmatprep.subr.mxu1 %v718_v23 }
 0x124   :  { %v545_v32 = vadd.f32 %v1095_v29, %v480_v28  ;;  %v1058_v33 = vadd.f32 %v1057_v31, %v1056_v26  ;;  %v1097_v34 = vpop.f32.mrf.mxu1  ;;  %1194 = vmatprep.mubr.f32.mxu0 %v572_v27  ;;  %1233 = vmatpush3.msra.mxu1 %v718_v23 }
 0x125   :  { %v1059_v35 = vpop.f32.mrf.mxu0  ;;  %v1098_v38 = vadd.f32 %v1097_v34, %v1096_v30  ;;  %1234 = vmatprep.subr.mxu1 %v717_v24 }
 0x126   :  { %v573_v36 = vmax.f32 %v545_v32, 0.0  ;;  %v485_v37 = vadd.f32 %v1058_v33, %v1529_v14  ;;  %v1099_v39 = vpop.f32.mrf.mxu1  ;;  %1235 = vmatpush3.msra.mxu1 %v717_v24 }
 0x127   :  { %v1060_v40 = vpop.f32.mrf.mxu0  ;;  %1236 = vmatprep.subr.mxu1 %v716_v25 }
 0x128   :  { %v550_v41 = vadd.f32 %v1098_v38, %v485_v37  ;;  %v1061_v42 = vadd.f32 %v1060_v40, %v1059_v35  ;;  %v1100_v43 = vpop.f32.mrf.mxu1  ;;  %1195 = vmatmul.mubr.f32.vlgmr.msra.gmra.mxu0 %v573_v36  ;;  %1237 = vmatpush3.msra.mxu1 %v716_v25 }
 0x129   :  { %v1062_v44 = vpop.f32.mrf.mxu0  ;;  %v1101_v47 = vadd.f32 %v1100_v43, %v1099_v39 }
 0x12a   :  { %v574_v45 = vmax.f32 %v550_v41, 0.0  ;;  %v488_v46 = vadd.f32 %v1061_v42, %v1529_v14  ;;  %v1102_v48 = vpop.f32.mrf.mxu1 }
 0x12b   :  { %v1063_v49 = vpop.f32.mrf.mxu0 }
 0x12c   :  { %v553_v50 = vadd.f32 %v1101_v47, %v488_v46  ;;  %v1064_v51 = vadd.f32 %v1063_v49, %v1062_v44  ;;  %v1103_v52 = vpop.f32.mrf.mxu1  ;;  %1197 = vmatprep.mubr.f32.mxu0 %v574_v45 }
 0x12d   :  { %v1065_v53 = vpop.f32.mrf.mxu0  ;;  %v1104_v56 = vadd.f32 %v1103_v52, %v1102_v48 }
 0x12e   :  { %v575_v54 = vmax.f32 %v553_v50, 0.0  ;;  %v493_v55 = vadd.f32 %v1064_v51, %v1529_v14  ;;  %v1105_v57 = vpop.f32.mrf.mxu1  ;;  %v1033_v50 = vld [vmem:[%s1597_s6] ss:$0 sm:$0xff]  ;;  %s1467_s6 = smov [#allocation10]  }
 0x12f   :  { %v1066_v58 = vpop.f32.mrf.mxu0  ;;  %s969_s27 = sshll.u32 %s1467_s6, 4  ;;  %s970_s27 = int_to_ptr.vmem [resolvable:$true] %s969_s27 }
 0x130   :  { %v558_v59 = vadd.f32 %v1104_v56, %v493_v55  ;;  %v1067_v60 = vadd.f32 %v1066_v58, %v1065_v53  ;;  %v1106_v61 = vpop.f32.mrf.mxu1  ;;  %1198 = vmatmul.mubr.f32.gmra.mxu0 %v575_v54  ;;  %s1429_s28 = scalar_lea.vmem %s970_s27, 1024  ;;  %p1434_p7 = scmp.lt.s32.totalorder %s970_s27, %s970_s27 }
 0x131   :  { %v1068_v62 = vpop.f32.mrf.mxu0  ;;  %v1107_v1 = vadd.f32 %v1106_v61, %v1105_v57  ;;  %p1430_p6 = scmp.ne.s32.totalorder %s970_s27, %s1429_s28  ;;  %p1435_p8 = scmp.lt.s32.totalorder %s1429_s28, %s1429_s28 }
 0x132   :  { %v576_v63 = vmax.f32 %v558_v59, 0.0  ;;  %v496_v0 = vadd.f32 %v1067_v60, %v1529_v14  ;;  %v1108_v2 = vpop.f32.mrf.mxu1 }
 0x133   :  { %v1069_v3 = vpop.f32.mrf.mxu0  ;;  %p1436_p9 = por %p1435_p8, %p1434_p7 }
 0x134   :  { %v561_v4 = vadd.f32 %v1107_v1, %v496_v0  ;;  %v1070_v5 = vadd.f32 %v1069_v3, %v1068_v62  ;;  %v1109_v6 = vpop.f32.mrf.mxu1  ;;  %1200 = vmatprep.mubr.f32.mxu0 %v576_v63 }
 0x135   :  { %v1071_v7 = vpop.f32.mrf.mxu0  ;;  %v1110_v10 = vadd.f32 %v1109_v6, %v1108_v2  ;;  %p1437_p10 = pnand %p1436_p9, %p1430_p6 }
 0x136   :  { %v577_v8 = vmax.f32 %v561_v4, 0.0  ;;  %v501_v9 = vadd.f32 %v1070_v5, %v1529_v14  ;;  %v1111_v11 = vpop.f32.mrf.mxu1 }
 0x137   :  { %v1072_v12 = vpop.f32.mrf.mxu0 }
 0x138   :  { %v566_v13 = vadd.f32 %v1110_v10, %v501_v9  ;;  %v1073_v15 = vadd.f32 %v1072_v12, %v1071_v7  ;;  %v1112_v16 = vpop.f32.mrf.mxu1  ;;  %1201 = vmatmul.mubr.f32.gmra.mxu0 %v577_v8 }
 0x139   :  { %v1113_v19 = vadd.f32 %v1112_v16, %v1111_v11 }
 0x13a   :  { %v578_v17 = vmax.f32 %v566_v13, 0.0  ;;  %v504_v18 = vadd.f32 %v1073_v15, %v1529_v14  ;;  %v1032_v14 = vld [vmem:[%s1595_s4] ss:$0 sm:$0xff] }
 0x13c   :  { %v569_v20 = vadd.f32 %v1113_v19, %v504_v18  ;;  %1203 = vmatprep.mubr.f32.mxu0 %v578_v17 }
 0x13e   :  { %v579_v21 = vmax.f32 %v569_v20, 0.0 }
 0x140   :  { %1204 = vmatmul.mubr.f32.gmra.mxu0 %v579_v21 }
 0x1e8   :  { %v1196_v26 = vpop.f32.mrf.mxu0 }
 0x1e9   :  { %v675_v27 = vadd.f32 %v1196_v26, %v1032_v14 }
 0x1ea   :  { %v669_v28 = vpop.f32.mrf.mxu0 }
 0x1eb   :  { %v670_v29 = vadd.f32 %v1032_v14, %v669_v28  ;;  %v709_v31 = vmax.f32 %v675_v27, 0.0 }
 0x1ed   :  { %v708_v30 = vmax.f32 %v670_v29, 0.0 }
 0x1ef   :  { %1238 = vmatprep.mubr.f32.mxu1 %v708_v30 }
 0x1f0   :  { %v1199_v32 = vpop.f32.mrf.mxu0  ;;  %1239 = vmatmul.mubr.f32.vlgmr.msra.gmra.mxu1 %v709_v31 }
 0x1f1   :  { %v685_v33 = vadd.f32 %v1199_v32, %v1032_v14 }
 0x1f2   :  { %v679_v34 = vpop.f32.mrf.mxu0 }
 0x1f3   :  { %v680_v35 = vadd.f32 %v1032_v14, %v679_v34  ;;  %v711_v37 = vmax.f32 %v685_v33, 0.0 }
 0x1f5   :  { %v710_v36 = vmax.f32 %v680_v35, 0.0 }
 0x1f7   :  { %1241 = vmatprep.mubr.f32.mxu1 %v710_v36 }
 0x1f8   :  { %v1202_v38 = vpop.f32.mrf.mxu0  ;;  %1242 = vmatmul.mubr.f32.gmra.mxu1 %v711_v37 }
 0x1f9   :  { %v695_v39 = vadd.f32 %v1202_v38, %v1032_v14 }
 0x1fa   :  { %v689_v40 = vpop.f32.mrf.mxu0 }
 0x1fb   :  { %v690_v41 = vadd.f32 %v1032_v14, %v689_v40  ;;  %v713_v43 = vmax.f32 %v695_v39, 0.0 }
 0x1fd   :  { %v712_v42 = vmax.f32 %v690_v41, 0.0 }
 0x1ff   :  { %1244 = vmatprep.mubr.f32.mxu1 %v712_v42 }
 0x200   :  { %v1205_v44 = vpop.f32.mrf.mxu0  ;;  %1245 = vmatmul.mubr.f32.gmra.mxu1 %v713_v43 }
 0x201   :  { %v705_v45 = vadd.f32 %v1205_v44, %v1032_v14 }
 0x202   :  { %v699_v46 = vpop.f32.mrf.mxu0 }
 0x203   :  { %v700_v47 = vadd.f32 %v1032_v14, %v699_v46  ;;  %v715_v49 = vmax.f32 %v705_v45, 0.0 }
 0x205   :  { %v714_v48 = vmax.f32 %v700_v47, 0.0 }
 0x207   :  { %1247 = vmatprep.mubr.f32.mxu1 %v714_v48 }
 0x208   :  { %1248 = vmatmul.mubr.f32.gmra.mxu1 %v715_v49 }
 0x2b0   :  { %v1240_v51 = vpop.f32.mrf.mxu1 }
 0x2b1   :  { %v811_v52 = vadd.f32 %v1240_v51, %v1033_v50 }
 0x2b2   :  { %v805_v53 = vpop.f32.mrf.mxu1 }
 0x2b3   :  { %v1545_v54 = vmax.f32 %v811_v52, 0.0  ;;  %v806_v55 = vadd.f32 %v1033_v50, %v805_v53 }
 0x2b5   :  { %v1547_v56 = vmax.f32 %v806_v55, 0.0  ;;  %v853_v57 = vmul.f32 %v1545_v54, %v1545_v54 }
 0x2b7   :  { %862 = vadd.xlane.f32.xlu0 %v853_v57  ;;  %v852_v60 = vmul.f32 %v1547_v56, %v1547_v56 }
 0x2b8   :  { %v1243_v58 = vpop.f32.mrf.mxu1 }
 0x2b9   :  { %v821_v59 = vadd.f32 %v1243_v58, %v1033_v50 }
 0x2ba   :  { %v815_v61 = vpop.f32.mrf.mxu1 }
 0x2bb   :  { %v1553_v62 = vmax.f32 %v821_v59, 0.0  ;;  %v816_v63 = vadd.f32 %v1033_v50, %v815_v61  ;;  %860 = vadd.xlane.f32.xlu0 %v852_v60 }
 0x2bd   :  { %v1555_v0 = vmax.f32 %v816_v63, 0.0  ;;  %v855_v1 = vmul.f32 %v1553_v62, %v1553_v62 }
 0x2bf   :  { %866 = vadd.xlane.f32.xlu1 %v855_v1  ;;  %v854_v4 = vmul.f32 %v1555_v0, %v1555_v0 }
 0x2c0   :  { %v1246_v2 = vpop.f32.mrf.mxu1 }
 0x2c1   :  { %v831_v3 = vadd.f32 %v1246_v2, %v1033_v50 }
 0x2c2   :  { %v825_v5 = vpop.f32.mrf.mxu1 }
 0x2c3   :  { %v1561_v6 = vmax.f32 %v831_v3, 0.0  ;;  %v826_v7 = vadd.f32 %v1033_v50, %v825_v5  ;;  %864 = vadd.xlane.f32.xlu1 %v854_v4 }
 0x2c5   :  { %v1563_v8 = vmax.f32 %v826_v7, 0.0  ;;  %v857_v9 = vmul.f32 %v1561_v6, %v1561_v6 }
 0x2c7   :  { %870 = vadd.xlane.f32.xlu1 %v857_v9  ;;  %v856_v10 = vmul.f32 %v1563_v8, %v1563_v8 }
 0x2c8   :  { %v1249_v11 = vpop.f32.mrf.mxu1 }
 0x2c9   :  { %v841_v12 = vadd.f32 %v1249_v11, %v1033_v50  ;;  %868 = vadd.xlane.f32.xlu0 %v856_v10 }
 0x2ca   :  { %v835_v13 = vpop.f32.mrf.mxu1 }
 0x2cb   :  { %v1569_v15 = vmax.f32 %v841_v12, 0.0  ;;  %v836_v16 = vadd.f32 %v1033_v50, %v835_v13 }
 0x2cd   :  { %v1571_v17 = vmax.f32 %v836_v16, 0.0  ;;  %v859_v18 = vmul.f32 %v1569_v15, %v1569_v15 }
 0x2cf   :  { %874 = vadd.xlane.f32.xlu1 %v859_v18  ;;  %v858_v19 = vmul.f32 %v1571_v17, %v1571_v17 }
 0x2d1   :  { %872 = vadd.xlane.f32.xlu0 %v858_v19 }
 0x340   :  { %v863_v20 = vpop.xlane.xlu0 %862 }
 0x341   :  { %1317 = vrsqrt.f32 %v863_v20  ;;  %vm885_vm0 = vcmp.eq.f32.partialorder %v863_v20, inf  ;;  %v888_v14 = vand.u32 2147483648, %v863_v20  ;;  %vm887_vm1 = vcmp.eq.f32.partialorder %v863_v20, 0.0 }
 0x344   :  { %v861_v21 = vpop.xlane.xlu0 %860 }
 0x345   :  { %1319 = vrsqrt.f32 %v861_v21  ;;  %vm878_vm2 = vcmp.eq.f32.partialorder %v861_v21, inf  ;;  %v881_v33 = vand.u32 2147483648, %v861_v21  ;;  %vm880_vm3 = vcmp.eq.f32.partialorder %v861_v21, 0.0 }
 0x348   :  { %v867_v22 = vpop.xlane.xlu1 %866 }
 0x349   :  { %1321 = vrsqrt.f32 %v867_v22  ;;  %vm899_vm4 = vcmp.eq.f32.partialorder %v867_v22, inf  ;;  %v902_v39 = vand.u32 2147483648, %v867_v22  ;;  %vm901_vm5 = vcmp.eq.f32.partialorder %v867_v22, 0.0 }
 0x34c   :  { %v865_v23 = vpop.xlane.xlu1 %864 }
 0x34d   :  { %1323 = vrsqrt.f32 %v865_v23  ;;  %vm892_vm6 = vcmp.eq.f32.partialorder %v865_v23, inf  ;;  %v895_v47 = vand.u32 2147483648, %v865_v23  ;;  %vm894_vm7 = vcmp.eq.f32.partialorder %v865_v23, 0.0 }
 0x34e   :  { %v1318_v24 = vpop.eup %1317 }
 0x34f   :  { %v884_v25 = vmul.f32 %v1318_v24, %v863_v20 }
 0x350   :  { %v871_v26 = vpop.xlane.xlu1 %870 }
 0x351   :  { %v886_v27 = vsel %vm885_vm0, %v863_v20, %v884_v25  ;;  %1325 = vrsqrt.f32 %v871_v26  ;;  %vm913_vm8 = vcmp.eq.f32.partialorder %v871_v26, inf  ;;  %v916_v55 = vand.u32 2147483648, %v871_v26 }
 0x352   :  { %v1320_v28 = vpop.eup %1319  ;;  %v889_v29 = vsel %vm887_vm1, %v888_v14, %v886_v27  ;;  %v869_v30 = vpop.xlane.xlu0 %868  ;;  %vm915_vm9 = vcmp.eq.f32.partialorder %v871_v26, 0.0 }
 0x353   :  { %v933_v31 = vmax.f32 %v889_v29, 1e-12  ;;  %v877_v32 = vmul.f32 %v1320_v28, %v861_v21  ;;  %1327 = vrsqrt.f32 %v869_v30  ;;  %vm906_vm10 = vcmp.eq.f32.partialorder %v869_v30, inf }
 0x354   :  { %v909_v61 = vand.u32 2147483648, %v869_v30  ;;  %vm908_vm11 = vcmp.eq.f32.partialorder %v869_v30, 0.0 }
 0x355   :  { %1329 = vrcp.f32 %v933_v31  ;;  %v879_v34 = vsel %vm878_vm2, %v861_v21, %v877_v32 }
 0x356   :  { %v1322_v35 = vpop.eup %1321  ;;  %v882_v36 = vsel %vm880_vm3, %v881_v33, %v879_v34 }
 0x357   :  { %v932_v37 = vmax.f32 %v882_v36, 1e-12  ;;  %v898_v38 = vmul.f32 %v1322_v35, %v867_v22 }
 0x358   :  { %v875_v40 = vpop.xlane.xlu1 %874 }
 0x359   :  { %1331 = vrcp.f32 %v932_v37  ;;  %v900_v41 = vsel %vm899_vm4, %v867_v22, %v898_v38  ;;  %vm927_vm12 = vcmp.eq.f32.partialorder %v875_v40, inf  ;;  %v930_v12 = vand.u32 2147483648, %v875_v40 }
 0x35a   :  { %v1324_v42 = vpop.eup %1323  ;;  %v903_v43 = vsel %vm901_vm5, %v902_v39, %v900_v41  ;;  %1333 = vrsqrt.f32 %v875_v40  ;;  %v873_v44 = vpop.xlane.xlu0 %872  ;;  %vm929_vm13 = vcmp.eq.f32.partialorder %v875_v40, 0.0 }
 0x35b   :  { %v935_v45 = vmax.f32 %v903_v43, 1e-12  ;;  %v891_v46 = vmul.f32 %v1324_v42, %v865_v23  ;;  %1335 = vrsqrt.f32 %v873_v44  ;;  %vm920_vm14 = vcmp.eq.f32.partialorder %v873_v44, inf }
 0x35c   :  { %vm922_vm15 = vcmp.eq.f32.partialorder %v873_v44, 0.0 }
 0x35d   :  { %1337 = vrcp.f32 %v935_v45  ;;  %v893_v48 = vsel %vm892_vm6, %v865_v23, %v891_v46 }
 0x35e   :  { %v1326_v49 = vpop.eup %1325  ;;  %v896_v50 = vsel %vm894_vm7, %v895_v47, %v893_v48 }
 0x35f   :  { %v934_v51 = vmax.f32 %v896_v50, 1e-12  ;;  %v912_v52 = vmul.f32 %v1326_v49, %v871_v26 }
 0x360   :  { %v1328_v53 = vpop.eup %1327 }
 0x361   :  { %1339 = vrcp.f32 %v934_v51  ;;  %v914_v57 = vsel %vm913_vm8, %v871_v26, %v912_v52  ;;  %v905_v58 = vmul.f32 %v1328_v53, %v869_v30 }
 0x362   :  { %v1330_v59 = vpop.eup %1329  ;;  %v917_v60 = vsel %vm915_vm9, %v916_v55, %v914_v57 }
 0x363   :  { %v937_v63 = vmax.f32 %v917_v60, 1e-12  ;;  %v907_v1 = vsel %vm906_vm10, %v869_v30, %v905_v58  ;;  %v949_v2 = vmul.f32 %v1330_v59, %v1545_v54  ;;  %v923_v54 = vand.u32 2147483648, %v873_v44 }
 0x364   :  { %v910_v3 = vsel %vm908_vm11, %v909_v61, %v907_v1 }
 0x365   :  { %1341 = vrcp.f32 %v937_v63  ;;  %v936_v4 = vmax.f32 %v910_v3, 1e-12  ;;  %957 = vst [vmem:[#allocation10 + $0x8] sm:$0xff] %v949_v2 }
 0x366   :  { %v1332_v5 = vpop.eup %1331 }
 0x367   :  { %v1334_v7 = vpop.eup %1333  ;;  %1343 = vrcp.f32 %v936_v4  ;;  %v948_v9 = vmul.f32 %v1332_v5, %v1547_v56 }
 0x368   :  { %v1336_v10 = vpop.eup %1335  ;;  %v926_v11 = vmul.f32 %v1334_v7, %v875_v40 }
 0x369   :  { %v919_v13 = vmul.f32 %v1336_v10, %v873_v44  ;;  %956 = vst [vmem:[#allocation10] sm:$0xff] %v948_v9 }
 0x36a   :  { %v1338_v16 = vpop.eup %1337  ;;  %v928_v18 = vsel %vm927_vm12, %v875_v40, %v926_v11 }
 0x36b   :  { %v931_v19 = vsel %vm929_vm13, %v930_v12, %v928_v18  ;;  %v921_v20 = vsel %vm920_vm14, %v873_v44, %v919_v13  ;;  %v951_v21 = vmul.f32 %v1338_v16, %v1553_v62 }
 0x36c   :  { %v939_v22 = vmax.f32 %v931_v19, 1e-12  ;;  %v924_v23 = vsel %vm922_vm15, %v923_v54, %v921_v20 }
 0x36d   :  { %v938_v24 = vmax.f32 %v924_v23, 1e-12  ;;  %959 = vst [vmem:[#allocation10 + $0x18] sm:$0xff] %v951_v21 }
 0x36e   :  { %v1340_v56 = vpop.eup %1339  ;;  %1345 = vrcp.f32 %v939_v22 }
 0x36f   :  { %1347 = vrcp.f32 %v938_v24  ;;  %v950_v25 = vmul.f32 %v1340_v56, %v1555_v0 }
 0x371   :  { %958 = vst [vmem:[#allocation10 + $0x10] sm:$0xff] %v950_v25 }
 0x372   :  { %v1342_v14 = vpop.eup %1341 }
 0x373   :  { %v953_v26 = vmul.f32 %v1342_v14, %v1561_v6 }
 0x374   :  { %v1344_v27 = vpop.eup %1343 }
 0x375   :  { %v952_v28 = vmul.f32 %v1344_v27, %v1563_v8  ;;  %961 = vst [vmem:[#allocation10 + $0x28] sm:$0xff] %v953_v26 }
 0x377   :  { %960 = vst [vmem:[#allocation10 + $0x20] sm:$0xff] %v952_v28 }
 0x37b   :  { %v1346_v62 = vpop.eup %1345 }
 0x37c   :  { %v1348_v29 = vpop.eup %1347  ;;  %v955_v30 = vmul.f32 %v1346_v62, %v1569_v15 }
 0x37d   :  { %v954_v31 = vmul.f32 %v1348_v29, %v1571_v17 }
 0x37e   :  { %963 = vst [vmem:[#allocation10 + $0x38] sm:$0xff] %v955_v30 }
 0x37f   :  { %962 = vst [vmem:[#allocation10 + $0x30] sm:$0xff] %v954_v31 }
 0x380   :  { %1440 = shalt.err (!%p1437_p10)
}
 0x381   :  { %975 = dma.vmem_to_hbm [thread:$0]  %s970_s27, 1024, %s1598_s7, [#allocation4], %s1464_s17, %s1464_s17, %s1465_s18  }
 0x382   :  { %1455 = dma.done.wait [#allocation4], 1024  }
 0x383   :  { %1456 = vsyncadd [#allocation4], 4294966272 }
 0x384   :  { %979 = vsyncpa [#allocation3], 1 }
 0x385   :  { %980 = vsyncpa [#allocation6], 1 }
 0x386   :  { %981 = vsyncpa [#allocation9], 1 }
 0x387   :  { %982 = vsyncpa [#allocation4], 1 }

</bundles_post_ra>
